<compile_context>
chip_gen: v6e
topology: v6e:2x2x1
jax: 0.10.0
libtpu: 0.0.40
codegen_flags: <defaults>
</compile_context>

<pallas_src>
import jax
import jax.numpy as jnp
from jax.experimental import pallas as pl
from jax.experimental.pallas import tpu as pltpu

EPS = 1e-5        # nn.BatchNorm2d default eps
SLOPE = 0.01      # nn.LeakyReLU default negative_slope
LANE = 128        # TPU vreg lane width
VMEM_LIMIT = 32 * 1024 * 1024   # explicit scoped-VMEM budget (safe on v5e/v6e/v7x)


def _leaky_relu(h):
    return jnp.where(h >= 0, h, SLOPE * h)


def _bn_lrelu_train(h, gamma, beta):
    # Training-mode BatchNorm2d: statistics over (N, H, W); H = W = 1 here, so
    # the reduction is over the batch axis (biased variance).  Applied as one
    # fused affine: h * scale + shift.
    mean = jnp.mean(h, axis=0, keepdims=True)
    var = jnp.mean((h - mean) ** 2, axis=0, keepdims=True)
    scale = gamma * jax.lax.rsqrt(var + EPS)      # rsqrt -> EUP (free slot)
    shift = beta - mean * scale
    return _leaky_relu(h * scale + shift)


# ----------------------------- kernels --------------------------------------

def _disc_train_kernel(x_ref,
                       w1_ref, g1_ref, be1_ref,
                       w2_ref, g2_ref, be2_ref,
                       w3_ref, g3_ref, be3_ref,
                       w4_ref, b4_ref,
                       out_ref):
    # Conv biases b1/b2/b3 intentionally absent: training-mode BN mean
    # subtraction cancels them exactly.
    h = jnp.dot(x_ref[...], w1_ref[...], preferred_element_type=jnp.float32)
    h = _bn_lrelu_train(h, g1_ref[...], be1_ref[...])
    h = jnp.dot(h, w2_ref[...], preferred_element_type=jnp.float32)
    h = _bn_lrelu_train(h, g2_ref[...], be2_ref[...])
    h = jnp.dot(h, w3_ref[...], preferred_element_type=jnp.float32)
    h = _bn_lrelu_train(h, g3_ref[...], be3_ref[...])
    out_ref[...] = (jnp.dot(h, w4_ref[...], preferred_element_type=jnp.float32)
                    + b4_ref[...])


def _disc_infer_kernel(x_ref,
                       w1_ref, s1_ref, t1_ref,
                       w2_ref, s2_ref, t2_ref,
                       w3_ref, s3_ref, t3_ref,
                       w4_ref, b4_ref,
                       out_ref):
    # Inference-mode BN (+ conv bias) pre-folded into per-channel (scale, shift)
    # in the wrapper -> purely elementwise, so batch tiling is safe.
    h = jnp.dot(x_ref[...], w1_ref[...], preferred_element_type=jnp.float32)
    h = _leaky_relu(h * s1_ref[...] + t1_ref[...])
    h = jnp.dot(h, w2_ref[...], preferred_element_type=jnp.float32)
    h = _leaky_relu(h * s2_ref[...] + t2_ref[...])
    h = jnp.dot(h, w3_ref[...], preferred_element_type=jnp.float32)
    h = _leaky_relu(h * s3_ref[...] + t3_ref[...])
    out_ref[...] = (jnp.dot(h, w4_ref[...], preferred_element_type=jnp.float32)
                    + b4_ref[...])


# ----------------------------- wrappers --------------------------------------

def _padded_head(params):
    """Zero-pad the final Linear to a lane-dense (hidden, 128*k) slab."""
    w4, b4 = params["w4"], params["b4"]
    hidden, out_dim = w4.shape
    out_pad = ((out_dim + LANE - 1) // LANE) * LANE
    w4p = jnp.zeros((hidden, out_pad), jnp.float32).at[:, :out_dim].set(w4)
    b4p = jnp.zeros((1, out_pad), jnp.float32).at[:, :out_dim].set(b4)
    return w4p, b4p, out_dim, out_pad


def discriminator_conv(x_nchw, params, *, training=True, tile_n=128):
    """x_nchw: (N, latent_size, 1, 1) f32 -> (N, domain_dims*2) f32."""
    N, C, H, W = x_nchw.shape
    assert H == 1 and W == 1, "DiscriminatorConv expects 1x1 spatial input"
    x2d = x_nchw.reshape(N, C)          # Squeeze glue: channels-last 2D slab
    w4p, b4p, out_dim, out_pad = _padded_head(params)

    if training:
        out = _call_train(x2d, params, w4p, b4p, out_pad)
    else:
        out = _call_infer(x2d, params, w4p, b4p, out_pad, tile_n)
    return out[:, :out_dim]


def _call_train(x2d, params, w4p, b4p, out_pad):
    # Training-mode BN couples all rows through the batch statistics, so the
    # whole batch lives in one VMEM-resident kernel invocation (no batch grid).
    N = x2d.shape[0]
    args = (x2d,
            params["w1"], params["g1"], params["be1"],
            params["w2"], params["g2"], params["be2"],
            params["w3"], params["g3"], params["be3"],
            w4p, b4p)
    vmem = pl.BlockSpec(memory_space=pltpu.MemorySpace.VMEM)
    return pl.pallas_call(
        _disc_train_kernel,
        out_shape=jax.ShapeDtypeStruct((N, out_pad), jnp.float32),
        in_specs=[vmem] * len(args),
        out_specs=vmem,
        compiler_params=pltpu.CompilerParams(vmem_limit_bytes=VMEM_LIMIT),
    )(*args)


def _call_infer(x2d, params, w4p, b4p, out_pad, tile_n):
    N, C = x2d.shape

    # Fold conv bias + running-stat BN into a per-channel affine (done once in
    # XLA, outside the kernel).
    def fold(b, g, be, rm, rv):
        scale = g * jax.lax.rsqrt(rv + EPS)
        shift = (b - rm) * scale + be
        return scale, shift

    s1, t1 = fold(params["b1"], params["g1"], params["be1"],
                  params["rm1"], params["rv1"])
    s2, t2 = fold(params["b2"], params["g2"], params["be2"],
                  params["rm2"], params["rv2"])
    s3, t3 = fold(params["b3"], params["g3"], params["be3"],
                  params["rm3"], params["rv3"])

    tile_n = min(tile_n, N)
    assert tile_n == N or (N % tile_n == 0 and tile_n % 8 == 0), (
        "batch must be divisible by tile_n (a multiple of 8)")

    def resident(a):
        # Full array as the block at every grid step -> stays VMEM-resident.
        return pl.BlockSpec(a.shape, lambda i: (0,) * a.ndim)

    args = (x2d,
            params["w1"], s1, t1,
            params["w2"], s2, t2,
            params["w3"], s3, t3,
            w4p, b4p)
    in_specs = [pl.BlockSpec((tile_n, C), lambda i: (i, 0))]
    in_specs += [resident(a) for a in args[1:]]

    return pl.pallas_call(
        _disc_infer_kernel,
        out_shape=jax.ShapeDtypeStruct((N, out_pad), jnp.float32),
        grid_spec=pltpu.PrefetchScalarGridSpec(
            num_scalar_prefetch=0,
            grid=(N // tile_n,),
            in_specs=in_specs,
            out_specs=pl.BlockSpec((tile_n, out_pad), lambda i: (i, 0)),
        ),
        compiler_params=pltpu.CompilerParams(
            dimension_semantics=("parallel",),   # v7x: shard batch over 2 TCs
            vmem_limit_bytes=VMEM_LIMIT),
    )(*args)


# ----------------------------- params / reference ----------------------------

def init_params(key, latent_size, hidden_size, domain_dims):
    """Deterministic synthetic parameters with the module's shapes.

    Conv2d(in, out, 1) weight (out, in, 1, 1) stored as (in, out);
    Linear(in, out) weight (out, in) stored as (in, out).
    rm*/rv* are BatchNorm running_mean / running_var (used in eval mode).
    """
    ks = jax.random.split(key, 12)
    out_dim = domain_dims * 2

    def mat(k, fan_in, fan_out):
        return (jax.random.normal(k, (fan_in, fan_out), jnp.float32)
                / jnp.sqrt(jnp.float32(fan_in)))

    def vec(k, n, scale=0.01):
        return scale * jax.random.normal(k, (1, n), jnp.float32)

    return dict(
        w1=mat(ks[0], latent_size, hidden_size),
        b1=vec(ks[1], hidden_size),
        g1=jnp.ones((1, hidden_size), jnp.float32),
        be1=jnp.zeros((1, hidden_size), jnp.float32),
        rm1=vec(ks[2], hidden_size, 0.05),
        rv1=jnp.ones((1, hidden_size), jnp.float32),
        w2=mat(ks[3], hidden_size, hidden_size),
        b2=vec(ks[4], hidden_size),
        g2=jnp.ones((1, hidden_size), jnp.float32),
        be2=jnp.zeros((1, hidden_size), jnp.float32),
        rm2=vec(ks[5], hidden_size, 0.05),
        rv2=jnp.ones((1, hidden_size), jnp.float32),
        w3=mat(ks[6], hidden_size, hidden_size),
        b3=vec(ks[7], hidden_size),
        g3=jnp.ones((1, hidden_size), jnp.float32),
        be3=jnp.zeros((1, hidden_size), jnp.float32),
        rm3=vec(ks[8], hidden_size, 0.05),
        rv3=jnp.ones((1, hidden_size), jnp.float32),
        w4=mat(ks[9], hidden_size, out_dim),
        b4=vec(ks[10], out_dim),
    )


def _reference(x_nchw, params, *, training):
    # Pure-JAX reference (includes conv biases; in training mode BN cancels
    # them, matching the kernel up to fp rounding).
    x = x_nchw.reshape(x_nchw.shape[0], x_nchw.shape[1])

    def bn_lrelu(h, g, be, rm, rv):
        if training:
            m = jnp.mean(h, axis=0, keepdims=True)
            v = jnp.mean((h - m) ** 2, axis=0, keepdims=True)
        else:
            m, v = rm, rv
        hn = (h - m) / jnp.sqrt(v + EPS) * g + be
        return jnp.where(hn >= 0, hn, SLOPE * hn)

    h = x @ params["w1"] + params["b1"]
    h = bn_lrelu(h, params["g1"], params["be1"], params["rm1"], params["rv1"])
    h = h @ params["w2"] + params["b2"]
    h = bn_lrelu(h, params["g2"], params["be2"], params["rm2"], params["rv2"])
    h = h @ params["w3"] + params["b3"]
    h = bn_lrelu(h, params["g3"], params["be3"], params["rm3"], params["rv3"])
    return h @ params["w4"] + params["b4"]


# ----------------------------- demo ------------------------------------------

if __name__ == "__main__":
    latent_size = 4
    hidden_size = 32
    domain_dims = 3

    key = jax.random.PRNGKey(0)
    k_x1, k_x2, k_p = jax.random.split(key, 3)
    params = init_params(k_p, latent_size, hidden_size, domain_dims)

    # 1) Training-mode BN (batch statistics): whole batch in one kernel.
    x_small = jax.random.normal(k_x1, (8, latent_size, 1, 1), jnp.float32)
    out_tr = jax.block_until_ready(
        discriminator_conv(x_small, params, training=True))
    ref_tr = _reference(x_small, params, training=True)
    assert out_tr.shape == (8, domain_dims * 2)
    assert jnp.allclose(out_tr, ref_tr, atol=1e-4, rtol=1e-4), \
        "training-mode mismatch vs reference"

    # 2) Inference-mode BN (running stats): batch-gridded, pipelined, parallel.
    x_big = jax.random.normal(k_x2, (256, latent_size, 1, 1), jnp.float32)
    out_inf = jax.block_until_ready(
        discriminator_conv(x_big, params, training=False, tile_n=128))
    ref_inf = _reference(x_big, params, training=False)
    assert out_inf.shape == (256, domain_dims * 2)
    assert jnp.allclose(out_inf, ref_inf, atol=1e-4, rtol=1e-4), \
        "inference-mode mismatch vs reference"

    print("KERNEL_OK")
</pallas_src>

<mosaic_0001>
module attributes {stable_mosaic.version = 11 : i64} {
  func.func @_disc_train_kernel(%arg0: memref<8x4xf32, #tpu.memory_space<vmem>>, %arg1: memref<4x32xf32, #tpu.memory_space<vmem>>, %arg2: memref<1x32xf32, #tpu.memory_space<vmem>>, %arg3: memref<1x32xf32, #tpu.memory_space<vmem>>, %arg4: memref<32x32xf32, #tpu.memory_space<vmem>>, %arg5: memref<1x32xf32, #tpu.memory_space<vmem>>, %arg6: memref<1x32xf32, #tpu.memory_space<vmem>>, %arg7: memref<32x32xf32, #tpu.memory_space<vmem>>, %arg8: memref<1x32xf32, #tpu.memory_space<vmem>>, %arg9: memref<1x32xf32, #tpu.memory_space<vmem>>, %arg10: memref<32x128xf32, #tpu.memory_space<vmem>>, %arg11: memref<1x128xf32, #tpu.memory_space<vmem>>, %arg12: memref<8x128xf32, #tpu.memory_space<vmem>>) attributes {dimension_semantics = [], scalar_prefetch = 0 : i64, scratch_operands = 0 : i64, tpu.core_type = #tpu.core_type<tc>} {
    %c0 = arith.constant 0 : index
    %c0_0 = arith.constant 0 : index
    %0 = vector.load %arg0[%c0, %c0_0] : memref<8x4xf32, #tpu.memory_space<vmem>>, vector<8x4xf32>
    %c0_1 = arith.constant 0 : index
    %c0_2 = arith.constant 0 : index
    %1 = vector.load %arg1[%c0_1, %c0_2] : memref<4x32xf32, #tpu.memory_space<vmem>>, vector<4x32xf32>
    %cst = arith.constant dense<0.000000e+00> : vector<8x32xf32>
    %2 = tpu.matmul %0, %1, %cst {dimension_numbers = #tpu.dot_dimension_numbers<[1], [0], [0], [1], [0, 0, 1, 1], [], []>} : vector<8x4xf32>, vector<4x32xf32>, vector<8x32xf32> -> vector<8x32xf32>
    %c0_3 = arith.constant 0 : index
    %c0_4 = arith.constant 0 : index
    %3 = vector.load %arg2[%c0_3, %c0_4] : memref<1x32xf32, #tpu.memory_space<vmem>>, vector<1x32xf32>
    %c0_5 = arith.constant 0 : index
    %c0_6 = arith.constant 0 : index
    %4 = vector.load %arg3[%c0_5, %c0_6] : memref<1x32xf32, #tpu.memory_space<vmem>>, vector<1x32xf32>
    %cst_7 = arith.constant dense<0.000000e+00> : vector<32xf32>
    %5 = vector.multi_reduction <add>, %2, %cst_7 [0] : vector<8x32xf32> to vector<32xf32>
    %6 = vector.shape_cast %5 : vector<32xf32> to vector<1x32xf32>
    %cst_8 = arith.constant 8.000000e+00 : f32
    %7 = vector.broadcast %cst_8 : f32 to vector<1x32xf32>
    %8 = arith.divf %6, %7 : vector<1x32xf32>
    %9 = vector.broadcast %8 : vector<1x32xf32> to vector<8x32xf32>
    %10 = arith.subf %2, %9 : vector<8x32xf32>
    %11 = arith.mulf %10, %10 : vector<8x32xf32>
    %cst_9 = arith.constant dense<0.000000e+00> : vector<32xf32>
    %12 = vector.multi_reduction <add>, %11, %cst_9 [0] : vector<8x32xf32> to vector<32xf32>
    %13 = vector.shape_cast %12 : vector<32xf32> to vector<1x32xf32>
    %cst_10 = arith.constant 8.000000e+00 : f32
    %14 = vector.broadcast %cst_10 : f32 to vector<1x32xf32>
    %15 = arith.divf %13, %14 : vector<1x32xf32>
    %cst_11 = arith.constant 9.99999974E-6 : f32
    %16 = vector.broadcast %cst_11 : f32 to vector<1x32xf32>
    %17 = arith.addf %15, %16 : vector<1x32xf32>
    %18 = math.rsqrt %17 : vector<1x32xf32>
    %19 = arith.mulf %3, %18 : vector<1x32xf32>
    %20 = arith.mulf %8, %19 : vector<1x32xf32>
    %21 = arith.subf %4, %20 : vector<1x32xf32>
    %22 = vector.broadcast %19 : vector<1x32xf32> to vector<8x32xf32>
    %23 = arith.mulf %2, %22 : vector<8x32xf32>
    %24 = vector.broadcast %21 : vector<1x32xf32> to vector<8x32xf32>
    %25 = arith.addf %23, %24 : vector<8x32xf32>
    %cst_12 = arith.constant 0.000000e+00 : f32
    %26 = vector.broadcast %cst_12 : f32 to vector<8x32xf32>
    %27 = arith.cmpf oge, %25, %26 : vector<8x32xf32>
    %cst_13 = arith.constant 0.00999999977 : f32
    %28 = vector.broadcast %cst_13 : f32 to vector<8x32xf32>
    %29 = arith.mulf %28, %25 : vector<8x32xf32>
    %30 = arith.select %27, %25, %29 : vector<8x32xi1>, vector<8x32xf32>
    %c0_14 = arith.constant 0 : index
    %c0_15 = arith.constant 0 : index
    %31 = vector.load %arg4[%c0_14, %c0_15] : memref<32x32xf32, #tpu.memory_space<vmem>>, vector<32x32xf32>
    %cst_16 = arith.constant dense<0.000000e+00> : vector<8x32xf32>
    %32 = tpu.matmul %30, %31, %cst_16 {dimension_numbers = #tpu.dot_dimension_numbers<[1], [0], [0], [1], [0, 0, 1, 1], [], []>} : vector<8x32xf32>, vector<32x32xf32>, vector<8x32xf32> -> vector<8x32xf32>
    %c0_17 = arith.constant 0 : index
    %c0_18 = arith.constant 0 : index
    %33 = vector.load %arg5[%c0_17, %c0_18] : memref<1x32xf32, #tpu.memory_space<vmem>>, vector<1x32xf32>
    %c0_19 = arith.constant 0 : index
    %c0_20 = arith.constant 0 : index
    %34 = vector.load %arg6[%c0_19, %c0_20] : memref<1x32xf32, #tpu.memory_space<vmem>>, vector<1x32xf32>
    %cst_21 = arith.constant dense<0.000000e+00> : vector<32xf32>
    %35 = vector.multi_reduction <add>, %32, %cst_21 [0] : vector<8x32xf32> to vector<32xf32>
    %36 = vector.shape_cast %35 : vector<32xf32> to vector<1x32xf32>
    %cst_22 = arith.constant 8.000000e+00 : f32
    %37 = vector.broadcast %cst_22 : f32 to vector<1x32xf32>
    %38 = arith.divf %36, %37 : vector<1x32xf32>
    %39 = vector.broadcast %38 : vector<1x32xf32> to vector<8x32xf32>
    %40 = arith.subf %32, %39 : vector<8x32xf32>
    %41 = arith.mulf %40, %40 : vector<8x32xf32>
    %cst_23 = arith.constant dense<0.000000e+00> : vector<32xf32>
    %42 = vector.multi_reduction <add>, %41, %cst_23 [0] : vector<8x32xf32> to vector<32xf32>
    %43 = vector.shape_cast %42 : vector<32xf32> to vector<1x32xf32>
    %cst_24 = arith.constant 8.000000e+00 : f32
    %44 = vector.broadcast %cst_24 : f32 to vector<1x32xf32>
    %45 = arith.divf %43, %44 : vector<1x32xf32>
    %cst_25 = arith.constant 9.99999974E-6 : f32
    %46 = vector.broadcast %cst_25 : f32 to vector<1x32xf32>
    %47 = arith.addf %45, %46 : vector<1x32xf32>
    %48 = math.rsqrt %47 : vector<1x32xf32>
    %49 = arith.mulf %33, %48 : vector<1x32xf32>
    %50 = arith.mulf %38, %49 : vector<1x32xf32>
    %51 = arith.subf %34, %50 : vector<1x32xf32>
    %52 = vector.broadcast %49 : vector<1x32xf32> to vector<8x32xf32>
    %53 = arith.mulf %32, %52 : vector<8x32xf32>
    %54 = vector.broadcast %51 : vector<1x32xf32> to vector<8x32xf32>
    %55 = arith.addf %53, %54 : vector<8x32xf32>
    %cst_26 = arith.constant 0.000000e+00 : f32
    %56 = vector.broadcast %cst_26 : f32 to vector<8x32xf32>
    %57 = arith.cmpf oge, %55, %56 : vector<8x32xf32>
    %cst_27 = arith.constant 0.00999999977 : f32
    %58 = vector.broadcast %cst_27 : f32 to vector<8x32xf32>
    %59 = arith.mulf %58, %55 : vector<8x32xf32>
    %60 = arith.select %57, %55, %59 : vector<8x32xi1>, vector<8x32xf32>
    %c0_28 = arith.constant 0 : index
    %c0_29 = arith.constant 0 : index
    %61 = vector.load %arg7[%c0_28, %c0_29] : memref<32x32xf32, #tpu.memory_space<vmem>>, vector<32x32xf32>
    %cst_30 = arith.constant dense<0.000000e+00> : vector<8x32xf32>
    %62 = tpu.matmul %60, %61, %cst_30 {dimension_numbers = #tpu.dot_dimension_numbers<[1], [0], [0], [1], [0, 0, 1, 1], [], []>} : vector<8x32xf32>, vector<32x32xf32>, vector<8x32xf32> -> vector<8x32xf32>
    %c0_31 = arith.constant 0 : index
    %c0_32 = arith.constant 0 : index
    %63 = vector.load %arg8[%c0_31, %c0_32] : memref<1x32xf32, #tpu.memory_space<vmem>>, vector<1x32xf32>
    %c0_33 = arith.constant 0 : index
    %c0_34 = arith.constant 0 : index
    %64 = vector.load %arg9[%c0_33, %c0_34] : memref<1x32xf32, #tpu.memory_space<vmem>>, vector<1x32xf32>
    %cst_35 = arith.constant dense<0.000000e+00> : vector<32xf32>
    %65 = vector.multi_reduction <add>, %62, %cst_35 [0] : vector<8x32xf32> to vector<32xf32>
    %66 = vector.shape_cast %65 : vector<32xf32> to vector<1x32xf32>
    %cst_36 = arith.constant 8.000000e+00 : f32
    %67 = vector.broadcast %cst_36 : f32 to vector<1x32xf32>
    %68 = arith.divf %66, %67 : vector<1x32xf32>
    %69 = vector.broadcast %68 : vector<1x32xf32> to vector<8x32xf32>
    %70 = arith.subf %62, %69 : vector<8x32xf32>
    %71 = arith.mulf %70, %70 : vector<8x32xf32>
    %cst_37 = arith.constant dense<0.000000e+00> : vector<32xf32>
    %72 = vector.multi_reduction <add>, %71, %cst_37 [0] : vector<8x32xf32> to vector<32xf32>
    %73 = vector.shape_cast %72 : vector<32xf32> to vector<1x32xf32>
    %cst_38 = arith.constant 8.000000e+00 : f32
    %74 = vector.broadcast %cst_38 : f32 to vector<1x32xf32>
    %75 = arith.divf %73, %74 : vector<1x32xf32>
    %cst_39 = arith.constant 9.99999974E-6 : f32
    %76 = vector.broadcast %cst_39 : f32 to vector<1x32xf32>
    %77 = arith.addf %75, %76 : vector<1x32xf32>
    %78 = math.rsqrt %77 : vector<1x32xf32>
    %79 = arith.mulf %63, %78 : vector<1x32xf32>
    %80 = arith.mulf %68, %79 : vector<1x32xf32>
    %81 = arith.subf %64, %80 : vector<1x32xf32>
    %82 = vector.broadcast %79 : vector<1x32xf32> to vector<8x32xf32>
    %83 = arith.mulf %62, %82 : vector<8x32xf32>
    %84 = vector.broadcast %81 : vector<1x32xf32> to vector<8x32xf32>
    %85 = arith.addf %83, %84 : vector<8x32xf32>
    %cst_40 = arith.constant 0.000000e+00 : f32
    %86 = vector.broadcast %cst_40 : f32 to vector<8x32xf32>
    %87 = arith.cmpf oge, %85, %86 : vector<8x32xf32>
    %cst_41 = arith.constant 0.00999999977 : f32
    %88 = vector.broadcast %cst_41 : f32 to vector<8x32xf32>
    %89 = arith.mulf %88, %85 : vector<8x32xf32>
    %90 = arith.select %87, %85, %89 : vector<8x32xi1>, vector<8x32xf32>
    %c0_42 = arith.constant 0 : index
    %c0_43 = arith.constant 0 : index
    %91 = vector.load %arg10[%c0_42, %c0_43] : memref<32x128xf32, #tpu.memory_space<vmem>>, vector<32x128xf32>
    %cst_44 = arith.constant dense<0.000000e+00> : vector<8x128xf32>
    %92 = tpu.matmul %90, %91, %cst_44 {dimension_numbers = #tpu.dot_dimension_numbers<[1], [0], [0], [1], [0, 0, 1, 1], [], []>} : vector<8x32xf32>, vector<32x128xf32>, vector<8x128xf32> -> vector<8x128xf32>
    %c0_45 = arith.constant 0 : index
    %c0_46 = arith.constant 0 : index
    %93 = vector.load %arg11[%c0_45, %c0_46] : memref<1x128xf32, #tpu.memory_space<vmem>>, vector<1x128xf32>
    %94 = vector.broadcast %93 : vector<1x128xf32> to vector<8x128xf32>
    %95 = arith.addf %92, %94 : vector<8x128xf32>
    %c0_47 = arith.constant 0 : index
    %c0_48 = arith.constant 0 : index
    %96 = vector.load %arg12[%c0_47, %c0_48] : memref<8x128xf32, #tpu.memory_space<vmem>>, vector<8x128xf32>
    tpu.vector_store %arg12[%c0_47, %c0_48], %95 {strides = array<i32>} : memref<8x128xf32, #tpu.memory_space<vmem>>, vector<8x128xf32>,
    return
  }
}

</mosaic_0001>

<bundles_post_ra>
// kernel: tpu_custom_call.1
= control target key start
LH: loop header
LB: loop body
LE: loop exit
PB: predicated region body
PF: predicated region fallthrough
CT: control target
= control target key end

     0   :  { %17 = vsyncpa [#allocation3], 0  ;;  %s857_s0 = inlined_call_operand.vmem [shape: f32[8,4], index: 0, kind: input, shape index: {}]   ;;  %s858_s1 = inlined_call_operand.vmem [shape: f32[4,32], index: 1, kind: input, shape index: {}]   ;;  %s859_s2 = inlined_call_operand.vmem [shape: f32[1,32], index: 2, kind: input, shape index: {}]   ;;  %s860_s3 = inlined_call_operand.vmem [shape: f32[1,32], index: 3, kind: input, shape index: {}]   ;;  %s861_s4 = inlined_call_operand.hbm [shape: f32[32,32], index: 4, kind: input, shape index: {}]   ;;  %s862_s5 = inlined_call_operand.vmem [shape: f32[1,32], index: 5, kind: input, shape index: {}]   ;;  %s863_s6 = inlined_call_operand.vmem [shape: f32[1,32], index: 6, kind: input, shape index: {}]   ;;  %s864_s7 = inlined_call_operand.hbm [shape: f32[32,32], index: 7, kind: input, shape index: {}]   ;;  %s865_s8 = inlined_call_operand.vmem [shape: f32[1,32], index: 8, kind: input, shape index: {}]   ;;  %s866_s9 = inlined_call_operand.vmem [shape: f32[1,32], index: 9, kind: input, shape index: {}]   ;;  %s867_s10 = inlined_call_operand.hbm [shape: f32[32,128], index: 10, kind: input, shape index: {}]   ;;  %s868_s11 = inlined_call_operand.vmem [shape: f32[1,128], index: 11, kind: input, shape index: {}]   ;;  %s869_s12 = inlined_call_operand.hbm [shape: f32[8,128], index: 12, kind: output, shape index: {}]  }
   0x1   :  { %18 = vsyncpa [#allocation6], 0 }
   0x2   :  { %19 = vsyncpa [#allocation4], 0  ;;  %s707_s21 = smov [#allocation5]   ;;  %s708_s23 = smov [#allocation2]  }
   0x3   :  { %s49_s22 = sshll.u32 %s707_s21, 4  ;;  %s33_s24 = sshll.u32 %s708_s23, 4  ;;  %s50_s22 = int_to_ptr.vmem [resolvable:$true] %s49_s22  ;;  %s34_s24 = int_to_ptr.vmem [resolvable:$true] %s33_s24 }
   0x4   :  { %s629_s25 = scalar_lea.vmem %s50_s22, 512  ;;  %p634_p1 = scmp.lt.s32.totalorder %s50_s22, %s50_s22 }
   0x5   :  { %p630_p0 = scmp.ne.s32.totalorder %s50_s22, %s629_s25  ;;  %p635_p2 = scmp.lt.s32.totalorder %s629_s25, %s629_s25 }
   0x7   :  { %p636_p3 = por %p635_p2, %p634_p1 }
   0x9   :  { %p637_p4 = pnand %p636_p3, %p630_p0 }
   0xb   :  { %640 = shalt.err (!%p637_p4)
}
   0xc   :  { %s709_s26 = smov 128   ;;  %s710_s27 = smov 8  }
   0xd   :  { %55 = dma.hbm_to_vmem [thread:$0]  %s864_s7, 512, %s50_s22, [#allocation6], %s709_s26, %s709_s26, %s710_s27  }
   0xe   :  { %s649_s30 = scalar_lea.vmem %s34_s24, 512  ;;  %p654_p6 = scmp.lt.s32.totalorder %s34_s24, %s34_s24 }
   0xf   :  { %p650_p5 = scmp.ne.s32.totalorder %s34_s24, %s649_s30  ;;  %p655_p7 = scmp.lt.s32.totalorder %s649_s30, %s649_s30 }
  0x11   :  { %p656_p8 = por %p655_p7, %p654_p6 }
  0x13   :  { %p657_p9 = pnand %p656_p8, %p650_p5 }
  0x15   :  { %660 = shalt.err (!%p657_p9)
}
  0x16   :  { %39 = dma.hbm_to_vmem [thread:$0]  %s861_s4, 512, %s34_s24, [#allocation3], %s709_s26, %s709_s26, %s710_s27  }
  0x17   :  { %s711_s15 = smov [#allocation7]  }
  0x18   :  { %s65_s16 = sshll.u32 %s711_s15, 4  ;;  %s66_s16 = int_to_ptr.vmem [resolvable:$true] %s65_s16 }
  0x19   :  { %s669_s17 = scalar_lea.vmem %s66_s16, 512  ;;  %p674_p11 = scmp.lt.s32.totalorder %s66_s16, %s66_s16 }
  0x1a   :  { %p670_p10 = scmp.ne.s32.totalorder %s66_s16, %s669_s17  ;;  %p675_p12 = scmp.lt.s32.totalorder %s669_s17, %s669_s17 }
  0x1c   :  { %p676_p13 = por %p675_p12, %p674_p11 }
  0x1e   :  { %p677_p0 = pnand %p676_p13, %p670_p10 }
  0x20   :  { %680 = shalt.err (!%p677_p0)
}
  0x21   :  { %71 = dma.hbm_to_vmem [thread:$0]  %s867_s10, 512, %s66_s16, [#allocation6], %s709_s26, %s709_s26, %s710_s27  }
  0x22   :  { %701 = dma.done.wait [#allocation3], 512  }
  0x23   :  { %702 = vsyncadd [#allocation3], 4294966784 }
  0x24   :  { %703 = dma.done.wait [#allocation6], 1024  }
  0x25   :  { %704 = vsyncadd [#allocation6], 4294966272  ;;  %v712_v0 = vmov 0.0   ;;  %vm713_vm0 = vmmov 0   ;;  %vm89_vm1 = vcmask 1043456   ;;  %vm85_vm2 = vcmask 31744  }
  0x26   :  { %569 = vmatprep.subr.mxu0 %v712_v0  ;;  %571 = vmatprep.mubr.msk.f32.mxu0 %vm713_vm0, %v712_v0  ;;  %v84_v1 = vld [vmem:[%s858_s1] sm:$0xf]  ;;  %v210_v3 = vld [vmem:[#allocation2 + $0x18] sm:$0xff]  ;;  %v209_v4 = vld [vmem:[#allocation2 + $0x10] sm:$0xff]  ;;  %vm165_vm3 = vcmask 261120   ;;  %v191_v28 = vlaneseq  ;;  %s714_s28 = smov [#allocation8]  }
  0x27   :  { %574 = vmatprep.subr.mxu1 %v712_v0  ;;  %582 = vmatprep.mubr.msk.f32.mxu1 %vm713_vm0, %v712_v0  ;;  %v83_v2 = vld [vmem:[%s857_s0] sm:$0xff]  ;;  %v208_v5 = vld [vmem:[#allocation2 + $0x8] sm:$0xff]  ;;  %v329_v43 = vld [vmem:[#allocation5 + $0x18] sm:$0xff]  ;;  %s536_s29 = sshll.u32 %s714_s28, 4  ;;  %s537_s29 = int_to_ptr.vmem [resolvable:$true] %s536_s29 }
  0x28   :  { %570 = vmatpush3.msk.msra.mxu0 %vm89_vm1, %v84_v1  ;;  %575 = vmatpush3.msra.mxu1 %v210_v3  ;;  %v207_v6 = vld [vmem:[#allocation2] sm:$0xff]  ;;  %v192_v29 = vshrl.u32 %v191_v28, 7  ;;  %v328_v44 = vld [vmem:[#allocation5 + $0x10] sm:$0xff]  ;;  %v327_v45 = vld [vmem:[#allocation5 + $0x8] sm:$0xff]  ;;  %p686_p2 = scmp.lt.s32.totalorder %s537_s29, %s537_s29 }
  0x29   :  { %572 = vmatmul.mubr.msk.f32.vlgmr.msra.gmra.mxu0 %vm85_vm2, %v83_v2  ;;  %585 = vmatprep.subr.mxu0 %v712_v0  ;;  %v163_v30 = vld [vmem:[%s859_s2] sm:$0x1] }
  0x2a   :  { %593 = vmatprep.mubr.msk.f32.mxu0 %vm713_vm0, %v712_v0  ;;  %576 = vmatprep.subr.mxu1 %v712_v0  ;;  %v813_v31 = vsub.s32 0, %v192_v29  ;;  %v164_v34 = vld [vmem:[%s860_s3] sm:$0x1] }
  0x2b   :  { %577 = vmatpush3.msra.mxu1 %v209_v4  ;;  %586 = vmatpush3.msra.mxu0 %v329_v43  ;;  %v326_v46 = vld [vmem:[#allocation5] sm:$0xff] }
  0x2c   :  { %578 = vmatprep.subr.mxu1 %v712_v0  ;;  %587 = vmatprep.subr.mxu0 %v712_v0 }
  0x2d   :  { %579 = vmatpush3.msra.mxu1 %v208_v5  ;;  %588 = vmatpush3.msra.mxu0 %v328_v44  ;;  %v284_v5 = vld [vmem:[%s862_s5] sm:$0x1] }
  0x2e   :  { %580 = vmatprep.subr.mxu1 %v712_v0  ;;  %589 = vmatprep.subr.mxu0 %v712_v0 }
  0x2f   :  { %581 = vmatpush3.msra.mxu1 %v207_v6  ;;  %590 = vmatpush3.msra.mxu0 %v327_v45  ;;  %v404_v45 = vld [vmem:[%s866_s9] sm:$0x1]  ;;  %s681_s9 = scalar_lea.vmem %s537_s29, 128 }
  0x30   :  { %596 = vmatprep.subr.mxu1 %v712_v0  ;;  %591 = vmatprep.subr.mxu0 %v712_v0  ;;  %p682_p1 = scmp.ne.s32.totalorder %s537_s29, %s681_s9  ;;  %p687_p3 = scmp.lt.s32.totalorder %s681_s9, %s681_s9 }
  0x31   :  { %592 = vmatpush3.msra.mxu0 %v326_v46 }
  0x32   :  { %p688_p4 = por %p687_p3, %p686_p2 }
  0x34   :  { %p689_p5 = pnand %p688_p4, %p682_p1 }
  0xe9   :  { %v159_v7 = vpop.f32.mrf.mxu0 }
  0xea   :  { %v166_v8 = vsel %vm165_vm3, %v159_v7, 0.0 }
  0xeb   :  { %v167_v9 = vrot.slane %v166_v8, 4  ;;  %v573_v10 = vpop.f32.mrf.mxu0 }
  0xed   :  { %v168_v11 = vadd.f32 %v167_v9, %v166_v8  ;;  %v285_v8 = vld [vmem:[%s863_s6] sm:$0x1] }
  0xef   :  { %v169_v12 = vrot.slane %v168_v11, 2 }
  0xf1   :  { %v170_v13 = vadd.f32 %v169_v12, %v168_v11 }
  0xf3   :  { %v171_v14 = vrot.slane %v170_v13, 1 }
  0xf5   :  { %v172_v15 = vadd.f32 %v171_v14, %v170_v13 }
  0xf7   :  { %v174_v16 = vmul.f32 0.125, %v172_v15 }
  0xf9   :  { %v175_v17 = vsub.f32 %v159_v7, %v174_v16 }
  0xfb   :  { %v176_v18 = vmul.f32 %v175_v17, %v175_v17  ;;  %v448_v17 = vld [vmem:[#allocation7 + $0x18] sm:$0xff] }
  0xfd   :  { %v177_v19 = vsel %vm165_vm3, %v176_v18, 0.0  ;;  %v447_v18 = vld [vmem:[#allocation7 + $0x10] sm:$0xff] }
  0xfe   :  { %v178_v20 = vrot.slane %v177_v19, 4 }
 0x100   :  { %v179_v21 = vadd.f32 %v178_v20, %v177_v19  ;;  %v446_v19 = vld [vmem:[#allocation7 + $0x8] sm:$0xff]  ;;  %v445_v20 = vld [vmem:[#allocation7] sm:$0xff] }
 0x102   :  { %v180_v22 = vrot.slane %v179_v21, 2 }
 0x104   :  { %v181_v23 = vadd.f32 %v180_v22, %v179_v21 }
 0x106   :  { %v182_v24 = vrot.slane %v181_v23, 1 }
 0x108   :  { %v183_v25 = vadd.f32 %v182_v24, %v181_v23 }
 0x10a   :  { %v184_v26 = vmul.f32 0.125, %v183_v25 }
 0x10c   :  { %v185_v27 = vadd.f32 1e-05, %v184_v26 }
 0x10e   :  { %615 = vrsqrt.f32 %v185_v27 }
 0x11b   :  { %v616_v32 = vpop.eup %615 }
 0x11c   :  { %v187_v33 = vmul.f32 %v616_v32, %v163_v30 }
 0x11e   :  { %v188_v35 = vmul.f32 %v187_v33, %v174_v16  ;;  %v194_v36 = vrot.slane %v187_v33, %v813_v31 }
 0x120   :  { %v189_v37 = vsub.f32 %v164_v34, %v188_v35  ;;  %v196_v38 = vmul.f32 %v194_v36, %v159_v7 }
 0x122   :  { %v201_v39 = vrot.slane %v189_v37, %v813_v31 }
 0x124   :  { %v203_v40 = vadd.f32 %v201_v39, %v196_v38 }
 0x126   :  { %vm204_vm4 = vcmp.ge.f32.partialorder %v203_v40, 0.0  ;;  %v205_v41 = vmul.f32 0.01, %v203_v40 }
 0x128   :  { %v206_v42 = vsel %vm204_vm4, %v203_v40, %v205_v41 }
 0x129   :  { %583 = vmatmul.mubr.msk.f32.vlgmr.msra.gmra.mxu1 %vm165_vm3, %v206_v42  ;;  %v403_v42 = vld [vmem:[%s865_s8] sm:$0x1] }
 0x12a   :  { %604 = vmatprep.mubr.msk.f32.mxu1 %vm713_vm0, %v712_v0  ;;  %597 = vmatpush3.msra.mxu1 %v448_v17 }
 0x12b   :  { %598 = vmatprep.subr.mxu1 %v712_v0 }
 0x12c   :  { %599 = vmatpush3.msra.mxu1 %v447_v18 }
 0x12d   :  { %600 = vmatprep.subr.mxu1 %v712_v0 }
 0x12e   :  { %601 = vmatpush3.msra.mxu1 %v446_v19 }
 0x12f   :  { %602 = vmatprep.subr.mxu1 %v712_v0 }
 0x130   :  { %603 = vmatpush3.msra.mxu1 %v445_v20 }
 0x1e9   :  { %v280_v47 = vpop.f32.mrf.mxu1 }
 0x1ea   :  { %v286_v48 = vsel %vm165_vm3, %v280_v47, 0.0 }
 0x1eb   :  { %v287_v49 = vrot.slane %v286_v48, 4  ;;  %v584_v50 = vpop.f32.mrf.mxu1 }
 0x1ed   :  { %v288_v51 = vadd.f32 %v287_v49, %v286_v48 }
 0x1ef   :  { %v289_v52 = vrot.slane %v288_v51, 2 }
 0x1f1   :  { %v290_v53 = vadd.f32 %v289_v52, %v288_v51 }
 0x1f3   :  { %v291_v54 = vrot.slane %v290_v53, 1 }
 0x1f5   :  { %v292_v55 = vadd.f32 %v291_v54, %v290_v53  ;;  %v550_v54 = vld [vmem:[%s868_s11] ss:$0 sm:$0xff] }
 0x1f7   :  { %v293_v56 = vmul.f32 0.125, %v292_v55 }
 0x1f9   :  { %v294_v57 = vsub.f32 %v280_v47, %v293_v56 }
 0x1fb   :  { %v295_v58 = vmul.f32 %v294_v57, %v294_v57 }
 0x1fd   :  { %v296_v59 = vsel %vm165_vm3, %v295_v58, 0.0 }
 0x1fe   :  { %v297_v60 = vrot.slane %v296_v59, 4 }
 0x200   :  { %v298_v61 = vadd.f32 %v297_v60, %v296_v59 }
 0x202   :  { %v299_v62 = vrot.slane %v298_v61, 2 }
 0x204   :  { %v300_v63 = vadd.f32 %v299_v62, %v298_v61 }
 0x206   :  { %v301_v1 = vrot.slane %v300_v63, 1 }
 0x208   :  { %v302_v2 = vadd.f32 %v301_v1, %v300_v63 }
 0x20a   :  { %v303_v3 = vmul.f32 0.125, %v302_v2 }
 0x20c   :  { %v304_v4 = vadd.f32 1e-05, %v303_v3 }
 0x20e   :  { %617 = vrsqrt.f32 %v304_v4 }
 0x21b   :  { %v618_v6 = vpop.eup %617 }
 0x21c   :  { %v306_v7 = vmul.f32 %v618_v6, %v284_v5 }
 0x21e   :  { %v307_v9 = vmul.f32 %v306_v7, %v293_v56  ;;  %v313_v10 = vrot.slane %v306_v7, %v813_v31 }
 0x220   :  { %v308_v11 = vsub.f32 %v285_v8, %v307_v9  ;;  %v315_v12 = vmul.f32 %v313_v10, %v280_v47 }
 0x222   :  { %v320_v13 = vrot.slane %v308_v11, %v813_v31 }
 0x224   :  { %v322_v14 = vadd.f32 %v320_v13, %v315_v12 }
 0x226   :  { %v324_v15 = vmul.f32 0.01, %v322_v14  ;;  %vm323_vm5 = vcmp.ge.f32.partialorder %v322_v14, 0.0 }
 0x228   :  { %v325_v16 = vsel %vm323_vm5, %v322_v14, %v324_v15 }
 0x229   :  { %594 = vmatmul.mubr.msk.f32.vlgmr.msra.gmra.mxu0 %vm165_vm3, %v325_v16 }
 0x2e9   :  { %v399_v21 = vpop.f32.mrf.mxu0 }
 0x2ea   :  { %v405_v22 = vsel %vm165_vm3, %v399_v21, 0.0 }
 0x2eb   :  { %v406_v23 = vrot.slane %v405_v22, 4  ;;  %v595_v24 = vpop.f32.mrf.mxu0 }
 0x2ed   :  { %v407_v25 = vadd.f32 %v406_v23, %v405_v22 }
 0x2ef   :  { %v408_v26 = vrot.slane %v407_v25, 2 }
 0x2f1   :  { %v409_v27 = vadd.f32 %v408_v26, %v407_v25 }
 0x2f3   :  { %v410_v28 = vrot.slane %v409_v27, 1 }
 0x2f5   :  { %v411_v29 = vadd.f32 %v410_v28, %v409_v27 }
 0x2f7   :  { %v412_v30 = vmul.f32 0.125, %v411_v29 }
 0x2f9   :  { %v413_v32 = vsub.f32 %v399_v21, %v412_v30 }
 0x2fb   :  { %v414_v33 = vmul.f32 %v413_v32, %v413_v32 }
 0x2fd   :  { %v415_v34 = vsel %vm165_vm3, %v414_v33, 0.0 }
 0x2fe   :  { %v416_v35 = vrot.slane %v415_v34, 4 }
 0x300   :  { %v417_v36 = vadd.f32 %v416_v35, %v415_v34 }
 0x302   :  { %v418_v37 = vrot.slane %v417_v36, 2 }
 0x304   :  { %v419_v0 = vadd.f32 %v418_v37, %v417_v36 }
 0x306   :  { %v420_v38 = vrot.slane %v419_v0, 1 }
 0x308   :  { %v421_v39 = vadd.f32 %v420_v38, %v419_v0 }
 0x30a   :  { %v422_v40 = vmul.f32 0.125, %v421_v39 }
 0x30c   :  { %v423_v41 = vadd.f32 1e-05, %v422_v40 }
 0x30e   :  { %619 = vrsqrt.f32 %v423_v41 }
 0x31b   :  { %v620_v43 = vpop.eup %619 }
 0x31c   :  { %v425_v44 = vmul.f32 %v620_v43, %v403_v42 }
 0x31e   :  { %v426_v46 = vmul.f32 %v425_v44, %v412_v30  ;;  %v432_v47 = vrot.slane %v425_v44, %v813_v31 }
 0x320   :  { %v427_v48 = vsub.f32 %v404_v45, %v426_v46  ;;  %v434_v49 = vmul.f32 %v432_v47, %v399_v21 }
 0x322   :  { %v439_v50 = vrot.slane %v427_v48, %v813_v31 }
 0x324   :  { %v441_v51 = vadd.f32 %v439_v50, %v434_v49 }
 0x326   :  { %v443_v52 = vmul.f32 0.01, %v441_v51  ;;  %vm442_vm6 = vcmp.ge.f32.partialorder %v441_v51, 0.0 }
 0x328   :  { %v444_v53 = vsel %vm442_vm6, %v441_v51, %v443_v52 }
 0x329   :  { %605 = vmatmul.mubr.msk.f32.vlgmr.msra.gmra.mxu1 %vm165_vm3, %v444_v53 }
 0x3e9   :  { %v525_v55 = vpop.f32.mrf.mxu1 }
 0x3ea   :  { %v526_v56 = vadd.f32 %v550_v54, %v525_v55 }
 0x3eb   :  { %v606_v57 = vpop.f32.mrf.mxu1 }
 0x3ec   :  { %529 = vst [vmem:[#allocation8] sm:$0xff] %v526_v56 }
 0x3ed   :  { %692 = shalt.err (!%p689_p5)
}
 0x3ee   :  { %539 = dma.vmem_to_hbm [thread:$0]  %s537_s29, 128, %s869_s12, [#allocation4]  }
 0x3ef   :  { %705 = dma.done.wait [#allocation4], 128  }
 0x3f0   :  { %706 = vsyncadd [#allocation4], 4294967168 }
 0x3f1   :  { %543 = vsyncpa [#allocation3], 1 }
 0x3f2   :  { %544 = vsyncpa [#allocation6], 1 }
 0x3f3   :  { %545 = vsyncpa [#allocation4], 1 }

</bundles_post_ra>
